<compile_context>
chip_gen: v7x
topology: tpu7x:2x2x1
jax: 0.10.0
libtpu: 0.0.40
codegen_flags: <defaults>
</compile_context>

<pallas_src>
import math

import jax
import jax.numpy as jnp
from jax.experimental import pallas as pl
from jax.experimental.pallas import tpu as pltpu


def _pick_row_tile(rows: int, batch: int, target: int = 512) -> int:
    """Largest row tile <= target that divides `rows` and is a multiple of lcm(8, batch).

    Multiple of `batch` -> the periodic hidden-projection row pattern is identical
    for every tile; multiple of 8 -> sublane alignment for the (8,128) tiling.
    """
    step = 8 * batch // math.gcd(8, batch)
    if rows % step != 0:
        return rows                      # degenerate fallback: one tile
    t = (min(target, rows) // step) * step
    while t >= step:
        if rows % t == 0:
            return t
        t -= step
    return rows


# --------------------------------------------------------------------------- #
# Kernel A: streaming score kernel (the heavy, HBM-bound part).
# Grid: one step per row tile of the flattened (S*B, E) encoder-output matrix.
# --------------------------------------------------------------------------- #
def _score_kernel(eo_ref, we_ref, hb_ref, v_ref, out_ref):
    """
    eo_ref : (tR, E)  bf16  encoder rows, row r = s*B + b     (streamed, pipelined)
    we_ref : (E, Dd)  bf16  attn-weight slice acting on enc    (resident)
    hb_ref : (tR, Dd) f32   hidden @ Wh^T + bias, tiled mod B  (resident)
    v_ref  : (1, Dd)  f32   v weight                           (resident)
    out_ref: (1, tR)  f32   raw attention scores for this tile (lane-dense row)
    """
    # Big matmul on the MXU with f32 accumulation.
    e_proj = jnp.dot(eo_ref[...], we_ref[...],
                     preferred_element_type=jnp.float32)            # (tR, Dd) f32
    energy = jnp.tanh(e_proj + hb_ref[...])                         # (tR, Dd) f32
    # score_r = <v, energy_r>: contract the last dim of both operands so the
    # (1, tR) result lands directly in the lane-major layout of the out block.
    scores = jax.lax.dot_general(
        v_ref[...], energy,
        dimension_numbers=(((1,), (1,)), ((), ())),
        preferred_element_type=jnp.float32)                         # (1, tR)
    out_ref[...] = scores


# --------------------------------------------------------------------------- #
# Kernel B: tiny epilogue — softmax over src_len per batch row.
# --------------------------------------------------------------------------- #
def _softmax_kernel(s_ref, o_ref):
    """s_ref: (B, S) raw scores; o_ref: (B, S) softmax over axis=1."""
    s = s_ref[...]
    m = jnp.max(s, axis=1, keepdims=True)
    ex = jnp.exp(s - m)
    denom = jnp.sum(ex, axis=1, keepdims=True)
    o_ref[...] = ex * pl.reciprocal(denom, approx=True)


def attention_forward(hidden, encoder_outputs, attn_w, attn_b, v_w, *, row_tile=512):
    """hidden: [B, Dd] f32; encoder_outputs: [S, B, E] (PyTorch layout).
    attn_w: [Dd, Dd+E] (nn.Linear weight, out x in; concat order = (hidden, enc)).
    attn_b: [Dd]; v_w: [1, Dd].  Returns softmax attention weights [B, S]."""
    S, B, E = encoder_outputs.shape
    Dd = hidden.shape[1]
    rows = S * B

    tR = _pick_row_tile(rows, B, target=row_tile)
    n_tiles = rows // tR

    # Free contiguous reshape (no transpose, no extra HBM pass over the dominant
    # input): row r of eo2d is token (s = r // B, b = r % B).
    eo2d = encoder_outputs.reshape(rows, E).astype(jnp.bfloat16)
    we = attn_w[:, Dd:].T.astype(jnp.bfloat16)                       # (E, Dd)

    # S-invariant hidden projection + bias, computed ONCE and tiled with period
    # B so it lines up with the interleaved (s, b) row order of eo2d.
    hb = hidden.astype(jnp.float32) @ attn_w[:, :Dd].T.astype(jnp.float32) + attn_b
    hb_rep = jnp.tile(hb, (tR // B, 1))                              # (tR, Dd) f32
    v2 = v_w.reshape(1, Dd).astype(jnp.float32)

    scores_tiles = pl.pallas_call(
        _score_kernel,
        out_shape=jax.ShapeDtypeStruct((n_tiles, tR), jnp.float32),
        grid=(n_tiles,),
        in_specs=[
            pl.BlockSpec((tR, E), lambda ri: (ri, 0)),      # streamed, double-buffered
            pl.BlockSpec((E, Dd), lambda ri: (0, 0)),       # resident weight
            pl.BlockSpec((tR, Dd), lambda ri: (0, 0)),      # resident hidden proj
            pl.BlockSpec((1, Dd), lambda ri: (0, 0)),       # resident v
        ],
        out_specs=pl.BlockSpec((1, tR), lambda ri: (ri, 0)),
        compiler_params=pltpu.CompilerParams(
            dimension_semantics=("parallel",),              # shard tiles across TCs (v7x)
            vmem_limit_bytes=32 * 1024 * 1024,              # explicit, v7x-safe budget
        ),
    )(eo2d, we, hb_rep, v2)

    # Layout plumbing on the tiny (S*B,) score slab only (previously a full
    # S*B*E transpose): flat r = s*B + b, so reshape(S, B).T gives [B, S].
    scores_bs = scores_tiles.reshape(S, B).T

    vmem = pl.BlockSpec(memory_space=pltpu.MemorySpace.VMEM)
    return pl.pallas_call(
        _softmax_kernel,
        out_shape=jax.ShapeDtypeStruct((B, S), jnp.float32),
        in_specs=[vmem],
        out_specs=vmem,
    )(scores_bs)


def attention_reference(hidden, encoder_outputs, attn_w, attn_b, v_w):
    """Plain-JAX mirror of the PyTorch forward, for verification (f32)."""
    S, B, E = encoder_outputs.shape
    h_rep = jnp.repeat(hidden[:, None, :], S, axis=1)            # (B, S, Dd)
    eo = jnp.transpose(encoder_outputs, (1, 0, 2))               # (B, S, E)
    cat = jnp.concatenate([h_rep, eo], axis=2)                   # (B, S, Dd+E)
    energy = jnp.tanh(cat @ attn_w.T + attn_b)                   # (B, S, Dd)
    attention = (energy @ v_w.T)[..., 0]                         # (B, S)
    return jax.nn.softmax(attention, axis=1)


if __name__ == "__main__":
    B, S, E, Dd = 2, 8, 32, 32

    key = jax.random.PRNGKey(0)
    k1, k2, k3, k4, k5 = jax.random.split(key, 5)
    hidden = jax.random.normal(k1, (B, Dd), dtype=jnp.float32)
    encoder_outputs = jax.random.normal(k2, (S, B, E), dtype=jnp.float32)

    # Parameter shapes from nn.Linear(E + Dd, Dd) and nn.Linear(Dd, 1, bias=False)
    attn_w = jax.random.normal(k3, (Dd, Dd + E), dtype=jnp.float32) * 0.1
    attn_b = jax.random.normal(k4, (Dd,), dtype=jnp.float32) * 0.1
    v_w = jax.random.normal(k5, (1, Dd), dtype=jnp.float32) * 0.1

    out = attention_forward(hidden, encoder_outputs, attn_w, attn_b, v_w)
    out = jax.block_until_ready(out)

    ref = attention_reference(hidden, encoder_outputs, attn_w, attn_b, v_w)
    assert out.shape == (B, S)
    # bf16 encoder/weight path + approx reciprocal -> loosened tolerance.
    assert jnp.allclose(out, ref, atol=2e-2, rtol=2e-2), "mismatch vs reference"

    print("KERNEL_OK")
</pallas_src>

<mosaic_0001>
module attributes {stable_mosaic.version = 11 : i64} {
  func.func @_score_kernel(%arg0: i32, %arg1: memref<16x32xbf16, #tpu.memory_space<vmem>>, %arg2: memref<32x32xbf16, #tpu.memory_space<vmem>>, %arg3: memref<16x32xf32, #tpu.memory_space<vmem>>, %arg4: memref<1x32xf32, #tpu.memory_space<vmem>>, %arg5: memref<1x16xf32, #tpu.memory_space<vmem>>) attributes {dimension_semantics = [#tpu.dimension_semantics<parallel>], iteration_bounds = array<i64: 1>, scalar_prefetch = 0 : i64, scratch_operands = 0 : i64, tpu.core_type = #tpu.core_type<tc>, window_params = [{transform_indices = @transform_0, window_bounds = array<i64: 16, 32>}, {pipeline_mode = #tpu.pipeline_mode<synchronous>, transform_indices = @transform_1, window_bounds = array<i64: 32, 32>}, {pipeline_mode = #tpu.pipeline_mode<synchronous>, transform_indices = @transform_2, window_bounds = array<i64: 16, 32>}, {pipeline_mode = #tpu.pipeline_mode<synchronous>, transform_indices = @transform_3, window_bounds = array<i64: 1, 32>}, {transform_indices = @transform_4, window_bounds = array<i64: 1, 16>}]} {
    %c0 = arith.constant 0 : index
    %c0_0 = arith.constant 0 : index
    %0 = vector.load %arg1[%c0, %c0_0] : memref<16x32xbf16, #tpu.memory_space<vmem>>, vector<16x32xbf16>
    %c0_1 = arith.constant 0 : index
    %c0_2 = arith.constant 0 : index
    %1 = vector.load %arg2[%c0_1, %c0_2] : memref<32x32xbf16, #tpu.memory_space<vmem>>, vector<32x32xbf16>
    %cst = arith.constant dense<0.000000e+00> : vector<16x32xf32>
    %2 = tpu.matmul %0, %1, %cst {dimension_numbers = #tpu.dot_dimension_numbers<[1], [0], [0], [1], [0, 0, 1, 1], [], []>} : vector<16x32xbf16>, vector<32x32xbf16>, vector<16x32xf32> -> vector<16x32xf32>
    %c0_3 = arith.constant 0 : index
    %c0_4 = arith.constant 0 : index
    %3 = vector.load %arg3[%c0_3, %c0_4] : memref<16x32xf32, #tpu.memory_space<vmem>>, vector<16x32xf32>
    %4 = arith.addf %2, %3 : vector<16x32xf32>
    %5 = math.tanh %4 : vector<16x32xf32>
    %c0_5 = arith.constant 0 : index
    %c0_6 = arith.constant 0 : index
    %6 = vector.load %arg4[%c0_5, %c0_6] : memref<1x32xf32, #tpu.memory_space<vmem>>, vector<1x32xf32>
    %cst_7 = arith.constant dense<0.000000e+00> : vector<1x16xf32>
    %7 = tpu.matmul %6, %5, %cst_7 {dimension_numbers = #tpu.dot_dimension_numbers<[1], [1], [0], [0], [0, 0, 1, 0], [], []>} : vector<1x32xf32>, vector<16x32xf32>, vector<1x16xf32> -> vector<1x16xf32>
    %c0_8 = arith.constant 0 : index
    %c0_9 = arith.constant 0 : index
    %8 = vector.load %arg5[%c0_8, %c0_9] : memref<1x16xf32, #tpu.memory_space<vmem>>, vector<1x16xf32>
    tpu.vector_store %arg5[%c0_8, %c0_9], %7 {strides = array<i32>} : memref<1x16xf32, #tpu.memory_space<vmem>>, vector<1x16xf32>,
    return
  }
  func.func @transform_0(%arg0: i32) -> (i32, i32) {
    %c0_i32 = arith.constant 0 : i32
    %c0_i32_0 = arith.constant 0 : i32
    return %arg0, %c0_i32 : i32, i32
  }
  func.func @transform_1(%arg0: i32) -> (i32, i32) {
    %c0_i32 = arith.constant 0 : i32
    %c0_i32_0 = arith.constant 0 : i32
    %c0_i32_1 = arith.constant 0 : i32
    return %c0_i32, %c0_i32_0 : i32, i32
  }
  func.func @transform_2(%arg0: i32) -> (i32, i32) {
    %c0_i32 = arith.constant 0 : i32
    %c0_i32_0 = arith.constant 0 : i32
    %c0_i32_1 = arith.constant 0 : i32
    return %c0_i32, %c0_i32_0 : i32, i32
  }
  func.func @transform_3(%arg0: i32) -> (i32, i32) {
    %c0_i32 = arith.constant 0 : i32
    %c0_i32_0 = arith.constant 0 : i32
    %c0_i32_1 = arith.constant 0 : i32
    return %c0_i32, %c0_i32_0 : i32, i32
  }
  func.func @transform_4(%arg0: i32) -> (i32, i32) {
    %c0_i32 = arith.constant 0 : i32
    %c0_i32_0 = arith.constant 0 : i32
    return %arg0, %c0_i32 : i32, i32
  }
}

</mosaic_0001>

<bundles_post_ra>
// kernel: tpu_custom_call.1
= control target key start
LH: loop header
LB: loop body
LE: loop exit
PB: predicated region body
PF: predicated region fallthrough
CT: control target
= control target key end

     0   :  { %9 = vsyncpa [#allocation3], 0  ;;  %s472_s0 = inlined_call_operand.hbm [shape: bf16[16,32], index: 0, kind: input, shape index: {}]   ;;  %s473_s1 = inlined_call_operand.hbm [shape: bf16[32,32], index: 1, kind: input, shape index: {}]   ;;  %s474_s2 = inlined_call_operand.hbm [shape: f32[16,32], index: 2, kind: input, shape index: {}]   ;;  %s475_s3 = inlined_call_operand.vmem [shape: f32[1,32], index: 3, kind: input, shape index: {}]   ;;  %s476_s4 = inlined_call_operand.hbm [shape: f32[1,16], index: 4, kind: output, shape index: {}]  }
   0x1   :  { %10 = vsyncpa [#allocation6], 0 }
   0x2   :  { %11 = vsyncpa [#allocation4], 0  ;;  %s374_s15 = smov [#allocation5]   ;;  %s375_s17 = smov [#allocation2]  }
   0x3   :  { %s29_s16 = sshll.u32 %s374_s15, 4  ;;  %s17_s18 = sshll.u32 %s375_s17, 4  ;;  %s30_s16 = int_to_ptr.vmem [resolvable:$true] %s29_s16  ;;  %s410_s18 = int_to_ptr.vmem [resolvable:$true] %s17_s18 }
   0x4   :  { %s280_s21 = scalar_lea.hbm %s473_s1, 256 }
   0x5   :  { %p281_p0 = scmp.ne.s32.totalorder %s473_s1, %s280_s21  ;;  %p284_p1 = scmp.lt.u32.totalorder %s280_s21, %s473_s1 }
   0x7   :  { %p286_p2 = pnand %p284_p1, %p281_p0 }
   0x9   :  { %289 = shalt.err (!%p286_p2)
}
   0xa   :  { %s290_s26 = scalar_lea.vmem %s30_s16, 256  ;;  %p295_p4 = scmp.lt.s32.totalorder %s30_s16, %s30_s16 }
   0xb   :  { %p291_p3 = scmp.ne.s32.totalorder %s30_s16, %s290_s26  ;;  %p296_p5 = scmp.lt.s32.totalorder %s290_s26, %s290_s26 }
   0xd   :  { %p297_p6 = por %p296_p5, %p295_p4 }
   0xf   :  { %p298_p7 = pnand %p297_p6, %p291_p3 }
  0x11   :  { %301 = shalt.err (!%p298_p7)
}
  0x12   :  { %s376_s27 = smov 64   ;;  %s377_s28 = smov 4  }
  0x13   :  { %35 = dma.hbm_to_vmem [thread:$0]  %s473_s1, 256, %s30_s16, [#allocation6], %s376_s27, %s376_s27, %s377_s28  }
  0x14   :  { %s302_s7 = scalar_lea.hbm %s472_s0, 128 }
  0x15   :  { %p303_p8 = scmp.ne.s32.totalorder %s472_s0, %s302_s7  ;;  %p306_p9 = scmp.lt.u32.totalorder %s302_s7, %s472_s0 }
  0x17   :  { %p308_p10 = pnand %p306_p9, %p303_p8 }
  0x19   :  { %311 = shalt.err (!%p308_p10)
}
  0x1a   :  { %s312_s12 = scalar_lea.vmem %s410_s18, 128  ;;  %p317_p12 = scmp.lt.s32.totalorder %s410_s18, %s410_s18 }
  0x1b   :  { %p313_p11 = scmp.ne.s32.totalorder %s410_s18, %s312_s12  ;;  %p318_p13 = scmp.lt.s32.totalorder %s312_s12, %s312_s12 }
  0x1d   :  { %p319_p0 = por %p318_p13, %p317_p12 }
  0x1f   :  { %p320_p1 = pnand %p319_p0, %p313_p11 }
  0x21   :  { %323 = shalt.err (!%p320_p1)
}
  0x22   :  { %23 = dma.hbm_to_vmem [thread:$0]  %s472_s0, 128, %s410_s18, [#allocation3], %s376_s27, %s376_s27, %s377_s28  }
  0x23   :  { %s378_s14 = smov [#allocation7]   ;;  %s324_s19 = scalar_lea.hbm %s474_s2, 256 }
  0x24   :  { %s41_s15 = sshll.u32 %s378_s14, 4  ;;  %p325_p2 = scmp.ne.s32.totalorder %s474_s2, %s324_s19  ;;  %s42_s15 = int_to_ptr.vmem [resolvable:$true] %s41_s15 }
  0x25   :  { %p328_p3 = scmp.lt.u32.totalorder %s324_s19, %s474_s2 }
  0x27   :  { %p330_p4 = pnand %p328_p3, %p325_p2 }
  0x29   :  { %333 = shalt.err (!%p330_p4)
}
  0x2a   :  { %s334_s24 = scalar_lea.vmem %s42_s15, 256  ;;  %p339_p6 = scmp.lt.s32.totalorder %s42_s15, %s42_s15 }
  0x2b   :  { %p335_p5 = scmp.ne.s32.totalorder %s42_s15, %s334_s24  ;;  %p340_p7 = scmp.lt.s32.totalorder %s334_s24, %s334_s24 }
  0x2d   :  { %p341_p8 = por %p340_p7, %p339_p6 }
  0x2f   :  { %p342_p9 = pnand %p341_p8, %p335_p5 }
  0x31   :  { %345 = shalt.err (!%p342_p9)
}
  0x32   :  { %s379_s0 = smov 128   ;;  %s380_s18 = smov 8  }
  0x33   :  { %47 = dma.hbm_to_vmem [thread:$0]  %s474_s2, 256, %s42_s15, [#allocation6], %s379_s0, %s379_s0, %s380_s18  }
  0x34   :  { %368 = dma.done.wait [#allocation3], 128  }
  0x35   :  { %369 = vsyncadd [#allocation3], 4294967168 }
  0x36   :  { %370 = dma.done.wait [#allocation6], 512  }
  0x37   :  { %371 = vsyncadd [#allocation6], 4294966784  ;;  %v381_v0 = vmov 0.0   ;;  %vm382_vm0 = vmmov 0   ;;  %v273_v1 = vld [vmem:[#allocation5] sm:$0xff]   ;;  %v274_v2 = vld [vmem:[#allocation5 + $0x8] sm:$0xff]  }
  0x38   :  { %243 = vmatprep.subr.bf16.mxu0 %v381_v0  ;;  %247 = vmatprep.mubr.msk.bf16.mxu0 %vm382_vm0, %v381_v0  ;;  %v275_v3 = vld [vmem:[#allocation2] sm:$0xff]   ;;  %vm85_vm1 = vcmask 261120   ;;  %v383_v4 = vmov 0.0|0.0   ;;  %v66_v5 = vld [vmem:[#allocation7] sm:$0xff]  ;;  %s384_s28 = smov [#allocation8]   ;;  %vm212_vm3 = vcmask 122880  }
  0x39   :  { %255 = vmatprep.mubr.msk.f32.mxu1 %vm382_vm0, %v381_v0  ;;  %244 = vmatpush3.bf16.msra.mxu0 %v273_v1  ;;  %v67_v7 = vld [vmem:[#allocation7 + $0x8] sm:$0xff]  ;;  %vm260_vm2 = vmpackc.low %vm85_vm1, %vm85_vm1  ;;  %s220_s29 = sshll.u32 %s384_s28, 4  ;;  %s221_s29 = int_to_ptr.vmem [resolvable:$true] %s220_s29 }
  0x3a   :  { %245 = vmatprep.subr.bf16.mxu0 %v381_v0  ;;  %258 = vmatprep.subr.bf16.mxu1 %v383_v4  ;;  %v132_v16 = vld [vmem:[%s475_s3] sm:$0x1]  ;;  %s346_s30 = scalar_lea.vmem %s221_s29, 16  ;;  %s350_s5 = scalar_lea.vmem %s221_s29, 32 }
  0x3b   :  { %p347_p10 = scmp.ne.s32.totalorder %s221_s29, %s346_s30  ;;  %p351_p11 = scmp.lt.s32.totalorder %s221_s29, %s221_s29 }
  0x3c   :  { %p352_p12 = scmp.lt.s32.totalorder %s350_s5, %s346_s30 }
  0x3d   :  { %246 = vmatpush3.bf16.msra.mxu0 %v274_v2 }
  0x3e   :  { %p353_p13 = por %p352_p12, %p351_p11 }
  0x40   :  { %248 = vmatmul.mubr.msk.bf16.vlgmr.msra.gmra.mrb[0].mxu0 %vm85_vm1, %v275_v3  ;;  %p354_p0 = pnand %p353_p13, %p347_p10 }
 0x113   :  { %v123_v6 = vpop.f32.mrb[0].mxu0 }
 0x114   :  { %v124_v8 = vadd.f32 %v123_v6, %v66_v5  ;;  %v249_v9 = vpop.f32.mrb[1].mxu0 }
 0x115   :  { %v126_v10 = vpop.f32.mrb[2].mxu0 }
 0x116   :  { %v127_v11 = vadd.f32 %v126_v10, %v67_v7  ;;  %v250_v12 = vpop.f32.mrb[3].mxu0  ;;  %276 = vtanh.f32 %v124_v8 }
 0x118   :  { %278 = vtanh.f32 %v127_v11 }
 0x120   :  { %v277_v13 = vpop.eup %276 }
 0x122   :  { %v279_v14 = vpop.eup %278 }
 0x123   :  { %v259_v15 = vpack.c.bf16 %v279_v14, %v277_v13 }
 0x125   :  { %261 = vmatpush3.bf16.xpose.msk.msra.mxu1 %vm260_vm2, %v259_v15 }
 0x12c   :  { %256 = vmatmul.mubr.msk.f32.vlgmr.msra.gmra.mrb[0].mxu1 %vm85_vm1, %v132_v16 }
 0x1ff   :  { %v208_v17 = vpop.f32.mrb[0].mxu1 }
 0x200   :  { %v257_v18 = vpop.f32.mrb[1].mxu1  ;;  %213 = vst.msk [vmem:[#allocation8] sm:$0x1] %vm212_vm3, %v208_v17 }
 0x201   :  { %357 = shalt.err (!%p354_p0)
}
 0x202   :  { %s358_s3 = scalar_lea.hbm %s476_s4, 16 }
 0x203   :  { %p359_p1 = scmp.ne.s32.totalorder %s476_s4, %s358_s3  ;;  %p362_p2 = scmp.lt.u32.totalorder %s358_s3, %s476_s4 }
 0x205   :  { %p364_p3 = pnand %p362_p2, %p359_p1 }
 0x207   :  { %367 = shalt.err (!%p364_p3)
}
 0x208   :  { %223 = dma.vmem_to_hbm [thread:$0]  %s221_s29, 16, %s476_s4, [#allocation4]  }
 0x209   :  { %372 = dma.done.wait [#allocation4], 16  }
 0x20a   :  { %373 = vsyncadd [#allocation4], 4294967280 }
 0x20b   :  { %227 = vsyncpa [#allocation3], 1 }
 0x20c   :  { %228 = vsyncpa [#allocation6], 1 }
 0x20d   :  { %229 = vsyncpa [#allocation4], 1 }

</bundles_post_ra>
